<compile_context>
chip_gen: v5e
topology: v5e:2x2
jax: 0.10.0
libtpu: 0.0.40
codegen_flags: <defaults>
</compile_context>

<pallas_src>
import functools
import math

import jax
import jax.numpy as jnp
from jax import lax
from jax.experimental import pallas as pl
from jax.experimental.pallas import tpu as pltpu


# ----------------------------- hardware queries ------------------------------

def _round_up(x, m):
    return (x + m - 1) // m * m


def _tpu_vmem_bytes():
    """Physical VMEM per core; falls back to the smallest (v7x, 64 MiB) value
    so the conservative path is always safe."""
    try:
        return int(pltpu.get_tpu_info().vmem_capacity_bytes)
    except Exception:
        return 64 << 20


def _tpu_num_tensorcores():
    """v7x (64 MiB VMEM/TC) has 2 TensorCores per chip; v5e/v6e (128 MiB) have
    1.  Defaults to 2 (only affects batch grouping, never correctness)."""
    return 2 if _tpu_vmem_bytes() <= (96 << 20) else 1


def _tile_budget_bytes():
    """Bytes allowed for the (double-buffered) tile working set.  Generation
    aware: ~57 MiB on the 128 MiB-VMEM chips (v5e/v6e), ~28 MiB on v7x."""
    return int(_tpu_vmem_bytes() * 0.45)


def _padded_bytes(shape, dtype):
    """Approx VMEM footprint of one buffer after (8,128) tiling."""
    itemsize = jnp.dtype(dtype).itemsize
    if len(shape) == 0:
        return 4
    if len(shape) == 1:
        return _round_up(shape[0], 128) * itemsize
    lead = 1
    for d in shape[:-2]:
        lead *= d
    return lead * _round_up(shape[-2], 8) * _round_up(shape[-1], 128) * itemsize


def _vmem_limit_bytes(dbuf_blocks, scratch_blocks=()):
    """Scoped-VMEM request: double-buffered pipeline blocks + single-buffered
    scratch + modest headroom, clamped generation-aware (<= ~5/8 of physical
    VMEM so the compiler keeps room for its own internal scratch)."""
    need = sum(2 * _padded_bytes(s, d) for (s, d) in dbuf_blocks)
    need += sum(_padded_bytes(s, d) for (s, d) in scratch_blocks)
    hi = max(40 << 20, _tpu_vmem_bytes() * 5 // 8)
    return int(min(max(need + (4 << 20), 16 << 20), hi))


# -------------- 3x3 conv + BN + ReLU  (direct conv, no im2col) ---------------

def _conv_bn_relu_kernel(x_ref, w_ref, scale_ref, shift_ref, o_ref, acc_ref,
                         *, tap_offsets, out_len):
    # x: (1, 1, cin_blk, lin)  w: (9, cin_blk, Cout)  scale/shift: (Cout, 1)
    # o: (1, 1, Cout, out_len) resident across the Cin-reduction axis
    k = pl.program_id(2)

    @pl.when(k == 0)
    def _():
        acc_ref[...] = jnp.zeros_like(acc_ref)

    x = x_ref[0, 0]                        # (cin_blk, lin) native/compute dtype
    acc = acc_ref[...]
    for t, off in enumerate(tap_offsets):  # 9 static taps -> 9 MXU matmuls
        w_t = w_ref[t]                     # (cin_blk, Cout)
        xs = x[:, off:off + out_len]       # (cin_blk, out_len) static slice
        acc = acc + lax.dot_general(w_t, xs, (((0,), (0,)), ((), ())),
                                    preferred_element_type=jnp.float32)
    acc_ref[...] = acc

    @pl.when(k == pl.num_programs(2) - 1)
    def _():
        y = acc_ref[...] * scale_ref[...] + shift_ref[...]
        o_ref[0, 0] = jnp.maximum(y, 0.0).astype(o_ref.dtype)


def _pick_cin_block(cin, cout, itemsize):
    # keep the per-step (9, cin_blk, Cout) weight block around <= ~4 MiB
    cap = max(8, ((4 << 20) // max(9 * cout * itemsize, 1)) // 8 * 8)
    if cin <= cap:
        return cin
    blk = (cap // 8) * 8
    while blk >= 8:
        if cin % blk == 0:
            return blk
        blk -= 8
    return cin


def _pick_row_tile(h, wp, cin_blk, cout, itemsize, budget):
    def fits(t):
        lin = (t + 2) * wp + 2
        lo = t * wp
        need = (2 * cin_blk * lin * itemsize          # x tile (double-buffered)
                + 2 * cout * lo * itemsize            # out tile
                + cout * lo * 4                       # f32 accumulator scratch
                + 2 * 9 * cin_blk * cout * itemsize)  # weights
        return need <= budget
    th = h
    while th > 8 and not fits(th):
        th = (th + 1) // 2
    return max(th, 1)


def conv3x3_bn_relu(x, w, b, bn_gamma, bn_beta, bn_mean, bn_var,
                    eps=1e-5, compute_dtype=None):
    """x: (B, Cin, H, W); w: (Cout, Cin, 3, 3).  Conv bias + inference-mode BN
    folded into a per-channel scale/shift; ReLU fused in the kernel.  MXU
    operands and the output use `compute_dtype` (defaults to x.dtype)."""
    # TODO(synk): BatchNorm2d is applied in inference mode (running stats);
    # training-mode batch statistics are not computed in-kernel.
    B, Cin, H, W = x.shape
    Cout = w.shape[0]
    cdt = jnp.dtype(compute_dtype) if compute_dtype is not None else x.dtype
    isz = cdt.itemsize
    Wp = W + 2

    cin_blk = _pick_cin_block(Cin, Cout, isz)
    th = _pick_row_tile(H, Wp, cin_blk, Cout, isz, _tile_budget_bytes())
    nh = (H + th - 1) // th
    h_pad = nh * th
    nk = Cin // cin_blk
    lin = (th + 2) * Wp + 2            # +2 slack for the dx=2 taps of the last row
    lo = th * Wp

    # Row-haloed, channel-major, flattened-spatial input (wrapper layout
    # plumbing; ~(1 + 2/th)x the input bytes -- no 9x im2col blow-up).
    xp = jnp.pad(x, ((0, 0), (0, 0), (1, 1 + h_pad - H), (1, 1)))
    xh = jnp.stack([xp[:, :, i * th:i * th + th + 2, :] for i in range(nh)],
                   axis=1)                                    # (B, nh, Cin, th+2, Wp)
    xh = xh.reshape(B, nh, Cin, (th + 2) * Wp)
    xh = jnp.pad(xh, ((0, 0), (0, 0), (0, 0), (0, 2))).astype(cdt)

    # Per-tap weights laid out (9, Cin, Cout): the Cin reduction axis can be
    # grid-tiled (second-minor, multiple of 8) with a lane-dense Cout minor dim.
    w2 = jnp.transpose(w, (2, 3, 1, 0)).reshape(9, Cin, Cout).astype(cdt)

    inv_std = 1.0 / jnp.sqrt(bn_var.astype(jnp.float32) + eps)
    g32 = bn_gamma.astype(jnp.float32)
    scale = (g32 * inv_std).reshape(Cout, 1)
    shift = (bn_beta.astype(jnp.float32)
             + (b.astype(jnp.float32) - bn_mean.astype(jnp.float32)) * g32 * inv_std
             ).reshape(Cout, 1)

    tap_offsets = tuple(dy * Wp + dx for dy in range(3) for dx in range(3))
    kernel = functools.partial(_conv_bn_relu_kernel,
                               tap_offsets=tap_offsets, out_len=lo)

    vmem = _vmem_limit_bytes(
        dbuf_blocks=[((1, 1, cin_blk, lin), cdt),
                     ((9, cin_blk, Cout), cdt),
                     ((Cout, 1), jnp.float32),
                     ((Cout, 1), jnp.float32),
                     ((1, 1, Cout, lo), cdt)],
        scratch_blocks=[((Cout, lo), jnp.float32)])

    out = pl.pallas_call(
        kernel,
        out_shape=jax.ShapeDtypeStruct((B, nh, Cout, lo), cdt),
        grid_spec=pltpu.PrefetchScalarGridSpec(
            num_scalar_prefetch=0,
            grid=(B, nh, nk),                     # Cin reduction axis last
            in_specs=[
                pl.BlockSpec((1, 1, cin_blk, lin), lambda bi, hi, ki: (bi, hi, ki, 0)),
                pl.BlockSpec((9, cin_blk, Cout), lambda bi, hi, ki: (0, ki, 0)),
                pl.BlockSpec((Cout, 1), lambda bi, hi, ki: (0, 0)),
                pl.BlockSpec((Cout, 1), lambda bi, hi, ki: (0, 0)),
            ],
            out_specs=pl.BlockSpec((1, 1, Cout, lo), lambda bi, hi, ki: (bi, hi, 0, 0)),
            scratch_shapes=[pltpu.VMEM((Cout, lo), jnp.float32)]),
        compiler_params=pltpu.CompilerParams(
            dimension_semantics=("parallel", "parallel", "arbitrary"),
            vmem_limit_bytes=vmem),
    )(xh, w2, scale, shift)

    # (B, nh, Cout, th*Wp) -> (B, Cout, H, W): drop the 2 padded columns of
    # every row and the bottom H padding (wrapper-side layout plumbing).
    out = out.reshape(B, nh, Cout, th, Wp)
    out = jnp.moveaxis(out, 2, 1).reshape(B, Cout, h_pad, Wp)
    return out[:, :, :H, :W]


# ------------------- channel attention (the `ta` block) ----------------------

def _cam_softmax_finish(acc_ref, attn_ref):
    e = acc_ref[...]
    # softmax(rowmax(E) - E) == exp(rowmin(E) - E) / sum(...): one row reduction.
    # NOTE: approx (EUP) reciprocal -> ~1e-3 relative error in the denominator,
    # well inside the validation tolerance.
    p = jnp.exp(jnp.min(e, axis=-1, keepdims=True) - e)
    denom = jnp.sum(p, axis=-1, keepdims=True)
    attn_ref[...] = (p * pl.reciprocal(denom, approx=True)).astype(attn_ref.dtype)


def _cam_energy_kernel(x_ref, attn_ref, acc_ref):
    # x: (Bb, C, tn)   attn: (Bb, C, C) activation dtype   acc: (Bb, C, C) f32
    k = pl.program_id(1)

    @pl.when(k == 0)
    def _():
        acc_ref[...] = jnp.zeros_like(acc_ref)

    x = x_ref[...]                        # native dtype straight to the MXU
    acc_ref[...] += jnp.einsum("bct,bdt->bcd", x, x,
                               preferred_element_type=jnp.float32)

    @pl.when(k == pl.num_programs(1) - 1)
    def _():
        _cam_softmax_finish(acc_ref, attn_ref)


def _cam_energy_rowsplit_kernel(xr_ref, xa_ref, attn_ref, acc_ref):
    # Same math, but only a (Bb, cr, C) row-slab of the energy/attention matrix
    # per grid step; the row axis is "parallel" so both v7x TensorCores work
    # when there is only one batch group.
    k = pl.program_id(2)

    @pl.when(k == 0)
    def _():
        acc_ref[...] = jnp.zeros_like(acc_ref)

    acc_ref[...] += jnp.einsum("brt,bct->brc", xr_ref[...], xa_ref[...],
                               preferred_element_type=jnp.float32)

    @pl.when(k == pl.num_programs(2) - 1)
    def _():
        _cam_softmax_finish(acc_ref, attn_ref)


def _cam_apply_kernel(gamma_ref, attn_ref, x_ref, o_ref):
    # gamma: SMEM (1,)   attn: (Bb, C, C) activation dtype   x/o: (Bb, C, tn)
    x = x_ref[...]
    out = jnp.einsum("bcd,bdt->bct", attn_ref[...], x,
                     preferred_element_type=jnp.float32)
    o_ref[...] = (gamma_ref[0] * out + x.astype(jnp.float32)).astype(o_ref.dtype)


def _pick_batch_block(b, c, num_tc):
    cap = max(1, 256 // max(c, 1))           # MXU row occupancy for small C
    if num_tc >= 2 and b > 1:
        cap = min(cap, b // 2)               # keep >= 2 parallel batch groups
    cap = max(1, min(cap, b))
    for bb in range(cap, 0, -1):
        if b % bb == 0:
            return bb
    return 1


def _pick_tile_n(n, c, bb, itemsize, budget):
    fixed = bb * _round_up(c, 8) * _round_up(c, 128) * 8    # attn + f32 energy
    per_col = max(1, 4 * bb * _round_up(c, 8) * itemsize)   # in/out, dbl-buffered
    avail = max(budget - fixed, 1 << 20)
    if per_col * n <= avail:
        return n                              # full row: no padding, no slicing
    return max(128, (avail // per_col) // 128 * 128)


def cam_module(x, gamma, out_dtype=None):
    """x: (B, C, H, W); gamma: (1,).  out = gamma * (softmax(max-E) @ X) + X."""
    B, C, H, W = x.shape
    N = H * W
    odt = jnp.dtype(out_dtype) if out_dtype is not None else x.dtype
    adt = x.dtype                              # attention kept in activation dtype
    isz = x.dtype.itemsize
    num_tc = _tpu_num_tensorcores()
    budget = _tile_budget_bytes()

    Bb = _pick_batch_block(B, C, num_tc)
    nb = B // Bb
    tn = _pick_tile_n(N, C, Bb, isz, budget)
    xr = x.reshape(B, C, N)
    if tn >= N:
        tn, n_pad = N, N
    else:
        n_pad = _round_up(N, tn)
    if n_pad != N:
        # zero columns contribute nothing to X @ X^T and are sliced off below
        xr = jnp.pad(xr, ((0, 0), (0, 0), (0, n_pad - N)))
    nk = n_pad // tn

    # ---- pass 1: energy accumulation + fused softmax -> attention ----
    row_split = (num_tc >= 2 and nb < 2 and C >= 16 and C % 16 == 0)
    if row_split:
        cr = C // 2
        vmem1 = _vmem_limit_bytes(
            dbuf_blocks=[((Bb, cr, tn), x.dtype), ((Bb, C, tn), x.dtype),
                         ((Bb, cr, C), adt)],
            scratch_blocks=[((Bb, cr, C), jnp.float32)])
        attn = pl.pallas_call(
            _cam_energy_rowsplit_kernel,
            out_shape=jax.ShapeDtypeStruct((B, C, C), adt),
            grid_spec=pltpu.PrefetchScalarGridSpec(
                num_scalar_prefetch=0,
                grid=(nb, 2, nk),
                in_specs=[
                    pl.BlockSpec((Bb, cr, tn), lambda bi, ri, ki: (bi, ri, ki)),
                    pl.BlockSpec((Bb, C, tn), lambda bi, ri, ki: (bi, 0, ki)),
                ],
                out_specs=pl.BlockSpec((Bb, cr, C), lambda bi, ri, ki: (bi, ri, 0)),
                scratch_shapes=[pltpu.VMEM((Bb, cr, C), jnp.float32)]),
            compiler_params=pltpu.CompilerParams(
                dimension_semantics=("parallel", "parallel", "arbitrary"),
                vmem_limit_bytes=vmem1),
        )(xr, xr)
    else:
        vmem1 = _vmem_limit_bytes(
            dbuf_blocks=[((Bb, C, tn), x.dtype), ((Bb, C, C), adt)],
            scratch_blocks=[((Bb, C, C), jnp.float32)])
        attn = pl.pallas_call(
            _cam_energy_kernel,
            out_shape=jax.ShapeDtypeStruct((B, C, C), adt),
            grid_spec=pltpu.PrefetchScalarGridSpec(
                num_scalar_prefetch=0,
                grid=(nb, nk),
                in_specs=[pl.BlockSpec((Bb, C, tn), lambda bi, ki: (bi, 0, ki))],
                out_specs=pl.BlockSpec((Bb, C, C), lambda bi, ki: (bi, 0, 0)),
                scratch_shapes=[pltpu.VMEM((Bb, C, C), jnp.float32)]),
            compiler_params=pltpu.CompilerParams(
                dimension_semantics=("parallel", "arbitrary"),
                vmem_limit_bytes=vmem1),
        )(xr)

    # ---- pass 2: out = gamma * (A @ X) + X, lane-dense tiles ----
    vmem2 = _vmem_limit_bytes(
        dbuf_blocks=[((Bb, C, C), adt), ((Bb, C, tn), x.dtype), ((Bb, C, tn), odt)])
    out = pl.pallas_call(
        _cam_apply_kernel,
        out_shape=jax.ShapeDtypeStruct((B, C, n_pad), odt),
        grid_spec=pltpu.PrefetchScalarGridSpec(
            num_scalar_prefetch=0,
            grid=(nb, nk),
            in_specs=[
                pl.BlockSpec(memory_space=pltpu.SMEM),                  # gamma
                pl.BlockSpec((Bb, C, C), lambda bi, ki: (bi, 0, 0)),    # attention
                pl.BlockSpec((Bb, C, tn), lambda bi, ki: (bi, 0, ki)),  # X tile
            ],
            out_specs=pl.BlockSpec((Bb, C, tn), lambda bi, ki: (bi, 0, ki)),
        ),
        compiler_params=pltpu.CompilerParams(
            dimension_semantics=("parallel", "parallel"),
            vmem_limit_bytes=vmem2),
    )(gamma.astype(jnp.float32), attn, xr)

    if n_pad != N:
        out = out[:, :, :N]
    return out.reshape(B, C, H, W)


# ------------------------------ full forward ---------------------------------

def double_conv_forward(x, p, compute_dtype=None):
    """(Conv3x3 -> BN -> ReLU) x2 followed by the `ta` channel-attention block.
    `compute_dtype=jnp.bfloat16` casts all MXU operands to bf16 (f32 accum /
    epilogues) for v6e/v7x MXU peak; default keeps the input dtype exactly."""
    # TODO(synk): DoubleConv.forward calls self.ta, which is not defined in the
    # provided module; it is implemented here as the channel-attention (CAM)
    # block used alongside DoubleConv in the source codebase.
    y = conv3x3_bn_relu(x, p["w1"], p["b1"], p["g1"], p["be1"], p["m1"], p["v1"],
                        compute_dtype=compute_dtype)
    y = conv3x3_bn_relu(y, p["w2"], p["b2"], p["g2"], p["be2"], p["m2"], p["v2"],
                        compute_dtype=compute_dtype)
    return cam_module(y, p["gamma"], out_dtype=x.dtype)


# ------------------------------ pure-JAX reference ---------------------------

def _conv_bn_relu_ref(x, w, b, g, be, m, v, eps=1e-5):
    y = lax.conv_general_dilated(
        x, w, window_strides=(1, 1), padding=((1, 1), (1, 1)),
        dimension_numbers=("NCHW", "OIHW", "NCHW"),
        precision=lax.Precision.HIGHEST)
    y = y + b.reshape(1, -1, 1, 1)
    y = (y - m.reshape(1, -1, 1, 1)) / jnp.sqrt(v.reshape(1, -1, 1, 1) + eps)
    y = y * g.reshape(1, -1, 1, 1) + be.reshape(1, -1, 1, 1)
    return jnp.maximum(y, 0.0)


def _cam_ref(x, gamma):
    B, C, H, W = x.shape
    q = x.reshape(B, C, -1)
    energy = jnp.einsum("bcn,bdn->bcd", q, q, precision=lax.Precision.HIGHEST)
    energy_new = jnp.max(energy, axis=-1, keepdims=True) - energy
    attention = jax.nn.softmax(energy_new, axis=-1)
    out = jnp.einsum("bcd,bdn->bcn", attention, q,
                     precision=lax.Precision.HIGHEST).reshape(B, C, H, W)
    return gamma[0] * out + x


def double_conv_ref(x, p):
    y = _conv_bn_relu_ref(x, p["w1"], p["b1"], p["g1"], p["be1"], p["m1"], p["v1"])
    y = _conv_bn_relu_ref(y, p["w2"], p["b2"], p["g2"], p["be2"], p["m2"], p["v2"])
    return _cam_ref(y, p["gamma"])


if __name__ == "__main__":
    B, Cin, Cout, H, W = 2, 4, 4, 16, 16
    key = jax.random.PRNGKey(0)
    ks = jax.random.split(key, 6)

    x = jax.random.normal(ks[0], (B, Cin, H, W), dtype=jnp.float32)

    fan = 9 * Cin
    params = dict(
        w1=jax.random.normal(ks[1], (Cin, Cin, 3, 3), jnp.float32) / math.sqrt(fan),
        b1=0.1 * jax.random.normal(ks[2], (Cin,), jnp.float32),
        g1=jnp.ones((Cin,), jnp.float32), be1=jnp.zeros((Cin,), jnp.float32),
        m1=jnp.zeros((Cin,), jnp.float32), v1=jnp.ones((Cin,), jnp.float32),
        w2=jax.random.normal(ks[3], (Cout, Cin, 3, 3), jnp.float32) / math.sqrt(fan),
        b2=0.1 * jax.random.normal(ks[4], (Cout,), jnp.float32),
        g2=jnp.full((Cout,), 0.5, jnp.float32), be2=jnp.zeros((Cout,), jnp.float32),
        m2=jnp.zeros((Cout,), jnp.float32), v2=jnp.ones((Cout,), jnp.float32),
        gamma=jnp.zeros((1,), jnp.float32),     # CAM gamma initialised to zeros
    )

    # 1) module init (gamma = 0): exercises the direct-conv/BN/ReLU kernels.
    out0 = jax.block_until_ready(double_conv_forward(x, params))
    ref0 = double_conv_ref(x, params)
    assert out0.shape == (B, Cout, H, W)
    assert jnp.allclose(out0, ref0, atol=3e-2, rtol=3e-2), "mismatch (gamma=0)"

    # 2) nonzero gamma: exercises the attention (energy/softmax/apply) kernels.
    params_g = dict(params, gamma=jnp.full((1,), 0.5, jnp.float32))
    out1 = jax.block_until_ready(double_conv_forward(x, params_g))
    ref1 = double_conv_ref(x, params_g)
    assert jnp.allclose(out1, ref1, atol=3e-2, rtol=3e-2), "mismatch (gamma=0.5)"

    # 3) bf16 MXU-operand path (f32 accumulation / epilogues): sanity check.
    out2 = jax.block_until_ready(
        double_conv_forward(x, params_g, compute_dtype=jnp.bfloat16))
    assert out2.shape == (B, Cout, H, W) and out2.dtype == x.dtype
    assert bool(jnp.isfinite(out2).all())
    assert float(jnp.mean(jnp.abs(out2 - ref1))) < 0.1, "bf16 path diverged"

    print("KERNEL_OK")
</pallas_src>

<mosaic_0001>
module attributes {stable_mosaic.version = 11 : i64} {
  func.func @_conv_bn_relu_kernel(%arg0: i32, %arg1: i32, %arg2: i32, %arg3: memref<1x1x4x326xf32, #tpu.memory_space<vmem>>, %arg4: memref<9x4x4xf32, #tpu.memory_space<vmem>>, %arg5: memref<4x1xf32, #tpu.memory_space<vmem>>, %arg6: memref<4x1xf32, #tpu.memory_space<vmem>>, %arg7: memref<1x1x4x288xf32, #tpu.memory_space<vmem>>, %arg8: memref<4x288xf32, #tpu.memory_space<vmem>>) attributes {dimension_semantics = [#tpu.dimension_semantics<parallel>, #tpu.dimension_semantics<parallel>, #tpu.dimension_semantics<arbitrary>], iteration_bounds = array<i64: 2, 1, 1>, scalar_prefetch = 0 : i64, scratch_operands = 1 : i64, tpu.core_type = #tpu.core_type<tc>, window_params = [{transform_indices = @transform_0, window_bounds = array<i64: 1, 1, 4, 326>}, {transform_indices = @transform_1, window_bounds = array<i64: 9, 4, 4>}, {pipeline_mode = #tpu.pipeline_mode<synchronous>, transform_indices = @transform_2, window_bounds = array<i64: 4, 1>}, {pipeline_mode = #tpu.pipeline_mode<synchronous>, transform_indices = @transform_3, window_bounds = array<i64: 4, 1>}, {transform_indices = @transform_4, window_bounds = array<i64: 1, 1, 4, 288>}]} {
    %c0_i32 = arith.constant 0 : i32
    %0 = arith.cmpi eq, %arg2, %c0_i32 : i32
    %1 = arith.extui %0 : i1 to i32
    %c0_i32_0 = arith.constant 0 : i32
    %2 = arith.cmpi ne, %1, %c0_i32_0 : i32
    scf.if %2 {
      %cst_37 = arith.constant 0.000000e+00 : f32
      %55 = vector.broadcast %cst_37 : f32 to vector<4x288xf32>
      %c0_38 = arith.constant 0 : index
      %c0_39 = arith.constant 0 : index
      %56 = vector.load %arg8[%c0_38, %c0_39] : memref<4x288xf32, #tpu.memory_space<vmem>>, vector<4x288xf32>
      tpu.vector_store %arg8[%c0_38, %c0_39], %55 {strides = array<i32>} : memref<4x288xf32, #tpu.memory_space<vmem>>, vector<4x288xf32>,
    } else {
    }
    %c0 = arith.constant 0 : index
    %c0_1 = arith.constant 0 : index
    %c0_2 = arith.constant 0 : index
    %c0_3 = arith.constant 0 : index
    %3 = vector.load %arg3[%c0, %c0_1, %c0_2, %c0_3] : memref<1x1x4x326xf32, #tpu.memory_space<vmem>>, vector<1x1x4x326xf32>
    %4 = vector.shape_cast %3 : vector<1x1x4x326xf32> to vector<4x326xf32>
    %c0_4 = arith.constant 0 : index
    %c0_5 = arith.constant 0 : index
    %5 = vector.load %arg8[%c0_4, %c0_5] : memref<4x288xf32, #tpu.memory_space<vmem>>, vector<4x288xf32>
    %c0_6 = arith.constant 0 : index
    %c0_7 = arith.constant 0 : index
    %c0_8 = arith.constant 0 : index
    %6 = vector.load %arg4[%c0_6, %c0_7, %c0_8] : memref<9x4x4xf32, #tpu.memory_space<vmem>>, vector<1x4x4xf32>
    %7 = vector.shape_cast %6 : vector<1x4x4xf32> to vector<4x4xf32>
    %8 = vector.extract_strided_slice %4 {offsets = [0, 0], sizes = [4, 288], strides = [1, 1]} : vector<4x326xf32> to vector<4x288xf32>
    %cst = arith.constant dense<0.000000e+00> : vector<4x288xf32>
    %9 = tpu.matmul %7, %8, %cst {dimension_numbers = #tpu.dot_dimension_numbers<[0], [0], [1], [1], [0, 1, 1, 1], [], []>} : vector<4x4xf32>, vector<4x288xf32>, vector<4x288xf32> -> vector<4x288xf32>
    %10 = arith.addf %5, %9 : vector<4x288xf32>
    %c1 = arith.constant 1 : index
    %c0_9 = arith.constant 0 : index
    %c0_10 = arith.constant 0 : index
    %11 = vector.load %arg4[%c1, %c0_9, %c0_10] : memref<9x4x4xf32, #tpu.memory_space<vmem>>, vector<1x4x4xf32>
    %12 = vector.shape_cast %11 : vector<1x4x4xf32> to vector<4x4xf32>
    %13 = vector.extract_strided_slice %4 {offsets = [0, 1], sizes = [4, 288], strides = [1, 1]} : vector<4x326xf32> to vector<4x288xf32>
    %cst_11 = arith.constant dense<0.000000e+00> : vector<4x288xf32>
    %14 = tpu.matmul %12, %13, %cst_11 {dimension_numbers = #tpu.dot_dimension_numbers<[0], [0], [1], [1], [0, 1, 1, 1], [], []>} : vector<4x4xf32>, vector<4x288xf32>, vector<4x288xf32> -> vector<4x288xf32>
    %15 = arith.addf %10, %14 : vector<4x288xf32>
    %c2 = arith.constant 2 : index
    %c0_12 = arith.constant 0 : index
    %c0_13 = arith.constant 0 : index
    %16 = vector.load %arg4[%c2, %c0_12, %c0_13] : memref<9x4x4xf32, #tpu.memory_space<vmem>>, vector<1x4x4xf32>
    %17 = vector.shape_cast %16 : vector<1x4x4xf32> to vector<4x4xf32>
    %18 = vector.extract_strided_slice %4 {offsets = [0, 2], sizes = [4, 288], strides = [1, 1]} : vector<4x326xf32> to vector<4x288xf32>
    %cst_14 = arith.constant dense<0.000000e+00> : vector<4x288xf32>
    %19 = tpu.matmul %17, %18, %cst_14 {dimension_numbers = #tpu.dot_dimension_numbers<[0], [0], [1], [1], [0, 1, 1, 1], [], []>} : vector<4x4xf32>, vector<4x288xf32>, vector<4x288xf32> -> vector<4x288xf32>
    %20 = arith.addf %15, %19 : vector<4x288xf32>
    %c3 = arith.constant 3 : index
    %c0_15 = arith.constant 0 : index
    %c0_16 = arith.constant 0 : index
    %21 = vector.load %arg4[%c3, %c0_15, %c0_16] : memref<9x4x4xf32, #tpu.memory_space<vmem>>, vector<1x4x4xf32>
    %22 = vector.shape_cast %21 : vector<1x4x4xf32> to vector<4x4xf32>
    %23 = vector.extract_strided_slice %4 {offsets = [0, 18], sizes = [4, 288], strides = [1, 1]} : vector<4x326xf32> to vector<4x288xf32>
    %cst_17 = arith.constant dense<0.000000e+00> : vector<4x288xf32>
    %24 = tpu.matmul %22, %23, %cst_17 {dimension_numbers = #tpu.dot_dimension_numbers<[0], [0], [1], [1], [0, 1, 1, 1], [], []>} : vector<4x4xf32>, vector<4x288xf32>, vector<4x288xf32> -> vector<4x288xf32>
    %25 = arith.addf %20, %24 : vector<4x288xf32>
    %c4 = arith.constant 4 : index
    %c0_18 = arith.constant 0 : index
    %c0_19 = arith.constant 0 : index
    %26 = vector.load %arg4[%c4, %c0_18, %c0_19] : memref<9x4x4xf32, #tpu.memory_space<vmem>>, vector<1x4x4xf32>
    %27 = vector.shape_cast %26 : vector<1x4x4xf32> to vector<4x4xf32>
    %28 = vector.extract_strided_slice %4 {offsets = [0, 19], sizes = [4, 288], strides = [1, 1]} : vector<4x326xf32> to vector<4x288xf32>
    %cst_20 = arith.constant dense<0.000000e+00> : vector<4x288xf32>
    %29 = tpu.matmul %27, %28, %cst_20 {dimension_numbers = #tpu.dot_dimension_numbers<[0], [0], [1], [1], [0, 1, 1, 1], [], []>} : vector<4x4xf32>, vector<4x288xf32>, vector<4x288xf32> -> vector<4x288xf32>
    %30 = arith.addf %25, %29 : vector<4x288xf32>
    %c5 = arith.constant 5 : index
    %c0_21 = arith.constant 0 : index
    %c0_22 = arith.constant 0 : index
    %31 = vector.load %arg4[%c5, %c0_21, %c0_22] : memref<9x4x4xf32, #tpu.memory_space<vmem>>, vector<1x4x4xf32>
    %32 = vector.shape_cast %31 : vector<1x4x4xf32> to vector<4x4xf32>
    %33 = vector.extract_strided_slice %4 {offsets = [0, 20], sizes = [4, 288], strides = [1, 1]} : vector<4x326xf32> to vector<4x288xf32>
    %cst_23 = arith.constant dense<0.000000e+00> : vector<4x288xf32>
    %34 = tpu.matmul %32, %33, %cst_23 {dimension_numbers = #tpu.dot_dimension_numbers<[0], [0], [1], [1], [0, 1, 1, 1], [], []>} : vector<4x4xf32>, vector<4x288xf32>, vector<4x288xf32> -> vector<4x288xf32>
    %35 = arith.addf %30, %34 : vector<4x288xf32>
    %c6 = arith.constant 6 : index
    %c0_24 = arith.constant 0 : index
    %c0_25 = arith.constant 0 : index
    %36 = vector.load %arg4[%c6, %c0_24, %c0_25] : memref<9x4x4xf32, #tpu.memory_space<vmem>>, vector<1x4x4xf32>
    %37 = vector.shape_cast %36 : vector<1x4x4xf32> to vector<4x4xf32>
    %38 = vector.extract_strided_slice %4 {offsets = [0, 36], sizes = [4, 288], strides = [1, 1]} : vector<4x326xf32> to vector<4x288xf32>
    %cst_26 = arith.constant dense<0.000000e+00> : vector<4x288xf32>
    %39 = tpu.matmul %37, %38, %cst_26 {dimension_numbers = #tpu.dot_dimension_numbers<[0], [0], [1], [1], [0, 1, 1, 1], [], []>} : vector<4x4xf32>, vector<4x288xf32>, vector<4x288xf32> -> vector<4x288xf32>
    %40 = arith.addf %35, %39 : vector<4x288xf32>
    %c7 = arith.constant 7 : index
    %c0_27 = arith.constant 0 : index
    %c0_28 = arith.constant 0 : index
    %41 = vector.load %arg4[%c7, %c0_27, %c0_28] : memref<9x4x4xf32, #tpu.memory_space<vmem>>, vector<1x4x4xf32>
    %42 = vector.shape_cast %41 : vector<1x4x4xf32> to vector<4x4xf32>
    %43 = vector.extract_strided_slice %4 {offsets = [0, 37], sizes = [4, 288], strides = [1, 1]} : vector<4x326xf32> to vector<4x288xf32>
    %cst_29 = arith.constant dense<0.000000e+00> : vector<4x288xf32>
    %44 = tpu.matmul %42, %43, %cst_29 {dimension_numbers = #tpu.dot_dimension_numbers<[0], [0], [1], [1], [0, 1, 1, 1], [], []>} : vector<4x4xf32>, vector<4x288xf32>, vector<4x288xf32> -> vector<4x288xf32>
    %45 = arith.addf %40, %44 : vector<4x288xf32>
    %c8 = arith.constant 8 : index
    %c0_30 = arith.constant 0 : index
    %c0_31 = arith.constant 0 : index
    %46 = vector.load %arg4[%c8, %c0_30, %c0_31] : memref<9x4x4xf32, #tpu.memory_space<vmem>>, vector<1x4x4xf32>
    %47 = vector.shape_cast %46 : vector<1x4x4xf32> to vector<4x4xf32>
    %48 = vector.extract_strided_slice %4 {offsets = [0, 38], sizes = [4, 288], strides = [1, 1]} : vector<4x326xf32> to vector<4x288xf32>
    %cst_32 = arith.constant dense<0.000000e+00> : vector<4x288xf32>
    %49 = tpu.matmul %47, %48, %cst_32 {dimension_numbers = #tpu.dot_dimension_numbers<[0], [0], [1], [1], [0, 1, 1, 1], [], []>} : vector<4x4xf32>, vector<4x288xf32>, vector<4x288xf32> -> vector<4x288xf32>
    %50 = arith.addf %45, %49 : vector<4x288xf32>
    %c0_33 = arith.constant 0 : index
    %c0_34 = arith.constant 0 : index
    %51 = vector.load %arg8[%c0_33, %c0_34] : memref<4x288xf32, #tpu.memory_space<vmem>>, vector<4x288xf32>
    tpu.vector_store %arg8[%c0_33, %c0_34], %50 {strides = array<i32>} : memref<4x288xf32, #tpu.memory_space<vmem>>, vector<4x288xf32>,
    %c0_i32_35 = arith.constant 0 : i32
    %52 = arith.cmpi eq, %arg2, %c0_i32_35 : i32
    %53 = arith.extui %52 : i1 to i32
    %c0_i32_36 = arith.constant 0 : i32
    %54 = arith.cmpi ne, %53, %c0_i32_36 : i32
    scf.if %54 {
      %c0_37 = arith.constant 0 : index
      %c0_38 = arith.constant 0 : index
      %55 = vector.load %arg8[%c0_37, %c0_38] : memref<4x288xf32, #tpu.memory_space<vmem>>, vector<4x288xf32>
      %c0_39 = arith.constant 0 : index
      %c0_40 = arith.constant 0 : index
      %56 = vector.load %arg5[%c0_39, %c0_40] : memref<4x1xf32, #tpu.memory_space<vmem>>, vector<4x1xf32>
      %57 = vector.broadcast %56 : vector<4x1xf32> to vector<4x288xf32>
      %58 = arith.mulf %55, %57 : vector<4x288xf32>
      %c0_41 = arith.constant 0 : index
      %c0_42 = arith.constant 0 : index
      %59 = vector.load %arg6[%c0_41, %c0_42] : memref<4x1xf32, #tpu.memory_space<vmem>>, vector<4x1xf32>
      %60 = vector.broadcast %59 : vector<4x1xf32> to vector<4x288xf32>
      %61 = arith.addf %58, %60 : vector<4x288xf32>
      %cst_43 = arith.constant 0.000000e+00 : f32
      %62 = vector.broadcast %cst_43 : f32 to vector<4x288xf32>
      %63 = arith.maximumf %61, %62 : vector<4x288xf32>
      %c0_44 = arith.constant 0 : index
      %c0_45 = arith.constant 0 : index
      %c0_46 = arith.constant 0 : index
      %c0_47 = arith.constant 0 : index
      %64 = vector.load %arg7[%c0_44, %c0_45, %c0_46, %c0_47] : memref<1x1x4x288xf32, #tpu.memory_space<vmem>>, vector<1x1x4x288xf32>
      %65 = vector.shape_cast %64 : vector<1x1x4x288xf32> to vector<4x288xf32>
      %66 = vector.shape_cast %63 : vector<4x288xf32> to vector<1x1x4x288xf32>
      tpu.vector_store %arg7[%c0_44, %c0_45, %c0_46, %c0_47], %66 {strides = array<i32>} : memref<1x1x4x288xf32, #tpu.memory_space<vmem>>, vector<1x1x4x288xf32>,
    } else {
    }
    return
  }
  func.func @transform_0(%arg0: i32, %arg1: i32, %arg2: i32) -> (i32, i32, i32, i32) {
    %c0_i32 = arith.constant 0 : i32
    %c0_i32_0 = arith.constant 0 : i32
    return %arg0, %arg1, %arg2, %c0_i32 : i32, i32, i32, i32
  }
  func.func @transform_1(%arg0: i32, %arg1: i32, %arg2: i32) -> (i32, i32, i32) {
    %c0_i32 = arith.constant 0 : i32
    %c0_i32_0 = arith.constant 0 : i32
    %c0_i32_1 = arith.constant 0 : i32
    return %c0_i32, %arg2, %c0_i32_0 : i32, i32, i32
  }
  func.func @transform_2(%arg0: i32, %arg1: i32, %arg2: i32) -> (i32, i32) {
    %c0_i32 = arith.constant 0 : i32
    %c0_i32_0 = arith.constant 0 : i32
    %c0_i32_1 = arith.constant 0 : i32
    return %c0_i32, %c0_i32_0 : i32, i32
  }
  func.func @transform_3(%arg0: i32, %arg1: i32, %arg2: i32) -> (i32, i32) {
    %c0_i32 = arith.constant 0 : i32
    %c0_i32_0 = arith.constant 0 : i32
    %c0_i32_1 = arith.constant 0 : i32
    return %c0_i32, %c0_i32_0 : i32, i32
  }
  func.func @transform_4(%arg0: i32, %arg1: i32, %arg2: i32) -> (i32, i32, i32, i32) {
    %c0_i32 = arith.constant 0 : i32
    %c0_i32_0 = arith.constant 0 : i32
    %c0_i32_1 = arith.constant 0 : i32
    return %arg0, %arg1, %c0_i32, %c0_i32_0 : i32, i32, i32, i32
  }
}

</mosaic_0001>

<bundles_post_ra>
// kernel: tpu_custom_call.1
= control target key start
LH: loop header
LB: loop body
LE: loop exit
PB: predicated region body
PF: predicated region fallthrough
CT: control target
= control target key end

     0   :  { %9 = vsyncpa [#allocation4], 0  ;;  %s2046_s0 = inlined_call_operand.vmem [shape: f32[2,1,4,326], index: 0, kind: input, shape index: {}]   ;;  %s2047_s1 = inlined_call_operand.vmem [shape: f32[9,4,4], index: 1, kind: input, shape index: {}]   ;;  %s2048_s2 = inlined_call_operand.vmem [shape: f32[4,1], index: 2, kind: input, shape index: {}]   ;;  %s2049_s3 = inlined_call_operand.vmem [shape: f32[4,1], index: 3, kind: input, shape index: {}]   ;;  %s2050_s4 = inlined_call_operand.hbm [shape: f32[2,1,4,288], index: 4, kind: output, shape index: {}]  }
   0x1   :  { %11 = vsyncpa [#allocation4 + $0x1], 0  ;;  %s1810_s15 = smov 0   ;;  %s1812_s16 = smov 0  }
   0x2   :  { %s1814_s17 = smov 0   ;;  %s1816_s18 = smov 0  }
   0x3   :  { %s1818_s19 = smov 0   ;;  %s1820_s20 = smov 0  }
   0x4 LB: > { %s1550_s21 = sadd.s32 4294967295, %s1772_s20   ;;  %s1551_s22 = sadd.s32 4294967294, %s1772_s20   ;;  %s1772_s20 = sphi %s1820_s20, %s17_s20   ;;  %s1768_s19 = sphi %s1818_s19, %s2057_s19   ;;  %s1764_s18 = sphi %s1816_s18, %s2056_s18   ;;  %s1760_s17 = sphi %s1814_s17, %s2055_s17   ;;  %s1756_s16 = sphi %s1812_s16, %s2054_s16   ;;  %s1752_s15 = sphi %s1810_s15, %s2053_s15  }
   0x5   : > { %s36_s23 = sadd.s32 1, %s1768_s19  ;;  %s143_s24 = sadd.s32 1, %s1760_s17 }
   0x6   : > { %p38_p0 = scmp.ge.s32.totalorder %s36_s23, 2  ;;  %p153_p1 = scmp.ne.s32.totalorder %s1760_s17, %s1756_s16 }
   0x7   : > { %p154_p2 = scmp.eq.s32.totalorder %s1550_s21, 1  ;;  %p159_p3 = scmp.ne.s32.totalorder %s1756_s16, %s1752_s15 }
   0x8   : > { %s2059_s23 = smov (%p38_p0, %s36_s23), 0  ;;  %p160_p5 = scmp.eq.s32.totalorder %s1551_s22, 1 }
   0x9   : > { %p1850_p4 = por %p154_p2, %p153_p1  ;;  %s138_s26 = ssub.s32 %s1768_s19, %s2059_s23 }
   0xa   : > { %p1555_p6 = scmp.ge.s32.totalorder %s1772_s20, 1  ;;  %p141_p7 = scmp.eq.s32.totalorder %s138_s26, 0 }
   0xb   : > { %p1857_p8 = por %p160_p5, %p159_p3  ;;  %p207_p9 = scmp.lt.s32.totalorder %s1772_s20, 3 }
   0xc   : > { %s1863_s28 = scalar_select %p141_p7, %s1760_s17, %s143_s24  }
   0xd   : > { %p208_p10 = pnand %p1555_p6, %p207_p9 }
   0xe   : > { %p245_p11 = scmp.lt.s32.totalorder (!%p208_p10), %s1764_s18, 1  ;;  %s1774_s12 = smov (!%p208_p10), 126  }
   0xf   : > { %211 = sbr.rel (%p208_p10) target bundleno = 568 (0x238), region = 36  ;;  %s1775_s13 = smov (!%p208_p10), 110  }
  0x10   : > { %s1776_s30 = smov (!%p208_p10), 127   ;;  %s1779_s9 = smov (!%p208_p10), 92  }
  0x11   : > { %s1780_s10 = smov (!%p208_p10), 91   ;;  %s242_s6 = sand.u32 (!%p208_p10), 1, %s1756_s16  }
  0x12   : > { %s1429_s21 = scalar_lea.sflag (!%p208_p10), [#allocation4], %s242_s6  ;;  %s1714_s29 = scalar_lea.hbm (!%p208_p10), %s2050_s4, 24 }
  0x14   : > { %v1577_v0 = vld [vmem:[%s2047_s1 + $0xc] sm:$0xf]  ;;  %v1570_v1 = vld [vmem:[%s2047_s1 + $0x8] sm:$0xf]  ;;  %s246_s7 = scalar_select %p245_p11, %s1764_s18, 1  ;;  %vm318_vm0 = vcmask 1043456  }
  0x15   : > { %644 = vxpose.xlu1.b32.start.end [1/1] (short) (narrow) %v1577_v0, 8  ;;  %519 = vxpose.xlu2.b32.start.end [1/1] (short) (narrow) %v1570_v1, 8  ;;  %v273_v13 = vld [vmem:[%s2047_s1] sm:$0xf]  ;;  %v1563_v15 = vld [vmem:[%s2047_s1 + $0x4] sm:$0xf] }
  0x16   : > { %s1623_s8 = smul.u32 12, %s246_s7  ;;  %v1584_v18 = vld [vmem:[%s2047_s1 + $0x10] sm:$0xf]  ;;  %v1591_v21 = vld [vmem:[%s2047_s1 + $0x14] sm:$0xf]  ;;  %s1777_s7 = smov 109  }
  0x17   : > { %vm438_vm1 = vcmask 1039360   ;;  %v1598_v42 = vld [vmem:[%s2047_s1 + $0x18] sm:$0xf]  ;;  %vm563_vm2 = vcmask 1031168   ;;  %v1605_v48 = vld [vmem:[%s2047_s1 + $0x1c] sm:$0xf] }
  0x18   : > { %s257_s11 = scalar_lea.vmem %s2046_s0, %s1623_s8  ;;  %s1778_s8 = smov 108   ;;  %v1612_v49 = vld [vmem:[%s2047_s1 + $0x20] sm:$0xf]  ;;  %vm688_vm3 = vcmask 900096   ;;  %vm314_vm4 = vcmask 31744   ;;  %vm813_vm5 = vcmask 891904  }
  0x19   : > { %v1876_v2 = vld [vmem:[%s257_s11] sm:$0xff]  ;;  %v270_v3 = vld [vmem:[%s257_s11 + $0x8] sm:$0xf]  ;;  %s1781_s11 = smov 90   ;;  %vm938_vm6 = vcmask 883712   ;;  %vm1063_vm7 = vcmask 752640  }
  0x1a   : > { %308 = vst [vmem:[#allocation1] ss:$2 sm:$0xff] %v1876_v2  ;;  %vm1188_vm8 = vcmask 744448   ;;  %vm1313_vm9 = vcmask 736256   ;;  %vm267_vm10 = vcmask 257024  }
  0x1b   : > { %310 = vst [vmem:[#allocation1 + $0x10] ss:$2 sm:$0xff] %v270_v3 }
  0x21   : > { %v1879_v4 = vld.sshfl [vmem:[#allocation1] sm:$0xff pattern:$0x75316420]  ;;  %v1881_v5 = vld.sshfl [vmem:[#allocation1 + $0x8] sm:$0xff pattern:$0x75316420] }
  0x22   : > { %426 = vst [vmem:[#allocation1] ss:$2 sm:$0xff] %v1876_v2  ;;  %v1884_v6 = vld.sshfl [vmem:[#allocation1 + $0x10] sm:$0xff pattern:$0x75316420]  ;;  %1559 = vmatpush.msk.msra.mxu1 %vm318_vm0, %v1881_v5  ;;  %1557 = vmatpush.msk.msra.mxu0 %vm318_vm0, %v1879_v4 }
  0x23   : > { %428 = vst [vmem:[#allocation1 + $0x10] ss:$2 sm:$0xff] %v270_v3  ;;  %1561 = vmatpush.msk.msra.mxu2 %vm318_vm0, %v1884_v6 }
  0x29   : > { %v429_v7 = vld.sshfl [vmem:[#allocation1] sm:$0xff pattern:$0x75316420]  ;;  %v430_v8 = vld.sshfl [vmem:[#allocation1 + $0x8] sm:$0xff pattern:$0x75316420] }
  0x2a   : > { %551 = vst [vmem:[#allocation1] ss:$2 sm:$0xff] %v1876_v2  ;;  %v431_v9 = vld.sshfl [vmem:[#allocation1 + $0x10] sm:$0xff pattern:$0x75316420] }
  0x2b   : > { %553 = vst [vmem:[#allocation1 + $0x10] ss:$2 sm:$0xff] %v270_v3 }
  0x31   : > { %v554_v10 = vld.sshfl [vmem:[#allocation1] sm:$0xff pattern:$0x75316420]  ;;  %v555_v14 = vld.sshfl [vmem:[#allocation1 + $0x8] sm:$0xff pattern:$0x75316420] }
  0x32   : > { %557 = vrot.lane.b32.xlu0 %v554_v10, %s1774_s12  ;;  %v556_v11 = vld.sshfl [vmem:[#allocation1 + $0x10] sm:$0xff pattern:$0x75316420]  ;;  %676 = vst [vmem:[#allocation1] ss:$2 sm:$0xff] %v1876_v2 }
  0x33   : > { %678 = vst [vmem:[#allocation1 + $0x10] ss:$2 sm:$0xff] %v270_v3 }
  0x39   : > { %v679_v16 = vld.sshfl [vmem:[#allocation1] sm:$0xff pattern:$0x75316420]  ;;  %v680_v17 = vld.sshfl [vmem:[#allocation1 + $0x8] sm:$0xff pattern:$0x75316420] }
  0x3a   : > { %v681_v12 = vld.sshfl [vmem:[#allocation1 + $0x10] sm:$0xff pattern:$0x75316420]  ;;  %801 = vst [vmem:[#allocation1] ss:$2 sm:$0xff] %v1876_v2 }
  0x3b   : > { %803 = vst [vmem:[#allocation1 + $0x10] ss:$2 sm:$0xff] %v270_v3  ;;  %686 = vrot.lane.b32.xlu0 %v681_v12, %s1775_s13 }
  0x41   : > { %v804_v19 = vld.sshfl [vmem:[#allocation1] sm:$0xff pattern:$0x75316420]  ;;  %v805_v20 = vld.sshfl [vmem:[#allocation1 + $0x8] sm:$0xff pattern:$0x75316420] }
  0x42   : > { %926 = vst [vmem:[#allocation1] ss:$2 sm:$0xff] %v1876_v2  ;;  %v806_v24 = vld.sshfl [vmem:[#allocation1 + $0x10] sm:$0xff pattern:$0x75316420] }
  0x43   : > { %928 = vst [vmem:[#allocation1 + $0x10] ss:$2 sm:$0xff] %v270_v3 }
  0x49   : > { %v929_v22 = vld.sshfl [vmem:[#allocation1] sm:$0xff pattern:$0x75316420]  ;;  %v930_v23 = vld.sshfl [vmem:[#allocation1 + $0x8] sm:$0xff pattern:$0x75316420] }
  0x4a   : > { %1051 = vst [vmem:[#allocation1] ss:$2 sm:$0xff] %v1876_v2  ;;  %v931_v27 = vld.sshfl [vmem:[#allocation1 + $0x10] sm:$0xff pattern:$0x75316420] }
  0x4b   : > { %1053 = vst [vmem:[#allocation1 + $0x10] ss:$2 sm:$0xff] %v270_v3 }
  0x51   : > { %v1055_v25 = vld.sshfl [vmem:[#allocation1 + $0x8] sm:$0xff pattern:$0x75316420]  ;;  %v1054_v26 = vld.sshfl [vmem:[#allocation1] sm:$0xff pattern:$0x75316420] }
  0x52   : > { %1176 = vst [vmem:[#allocation1] ss:$2 sm:$0xff] %v1876_v2  ;;  %v1056_v28 = vld.sshfl [vmem:[#allocation1 + $0x10] sm:$0xff pattern:$0x75316420] }
  0x53   : > { %1178 = vst [vmem:[#allocation1 + $0x10] ss:$2 sm:$0xff] %v270_v3 }
  0x59   : > { %v1180_v30 = vld.sshfl [vmem:[#allocation1 + $0x8] sm:$0xff pattern:$0x75316420]  ;;  %v1179_v31 = vld.sshfl [vmem:[#allocation1] sm:$0xff pattern:$0x75316420] }
  0x5a   : > { %v1181_v29 = vld.sshfl [vmem:[#allocation1 + $0x10] sm:$0xff pattern:$0x75316420]  ;;  %1301 = vst [vmem:[#allocation1] ss:$2 sm:$0xff] %v1876_v2 }
  0x5b   : > { %1303 = vst [vmem:[#allocation1 + $0x10] ss:$2 sm:$0xff] %v270_v3 }
  0x5d   : > { %274 = vxpose.xlu0.b32.start.end [1/1] (short) (narrow) %v273_v13, 8 }
  0x61   : > { %v1304_v33 = vld.sshfl [vmem:[#allocation1] sm:$0xff pattern:$0x75316420]  ;;  %v1305_v34 = vld.sshfl [vmem:[#allocation1 + $0x8] sm:$0xff pattern:$0x75316420] }
  0x62   : > { %v1306_v32 = vld.sshfl [vmem:[#allocation1 + $0x10] sm:$0xff pattern:$0x75316420] }
  0x65   : > { %394 = vxpose.xlu0.b32.start.end [1/1] (short) (narrow) %v1563_v15, 8 }
  0x6d   : > { %769 = vxpose.xlu0.b32.start.end [1/1] (short) (narrow) %v1584_v18, 8 }
  0x6f   : > { %432 = vrot.lane.b32.xlu1 %v429_v7, %s1776_s30 }
  0x75   : > { %894 = vxpose.xlu0.b32.start.end [1/1] (short) (narrow) %v1591_v21, 8  ;;  %v1783_v21 = vmov 0  }
  0x77   : > { %434 = vrot.lane.b32.xlu1 %v430_v8, %s1776_s30 }
  0x7e   : > { %436 = vrot.lane.b32.xlu2 %v431_v9, %s1776_s30 }
  0x7f   : > { %559 = vrot.lane.b32.xlu1 %v555_v14, %s1774_s12 }
  0x86   : > { %682 = vrot.lane.b32.xlu2 %v679_v16, %s1775_s13 }
  0x87   : > { %561 = vrot.lane.b32.xlu1 %v556_v11, %s1774_s12 }
  0x8e   : > { %807 = vrot.lane.b32.xlu2 %v804_v19, %s1777_s7 }
  0x8f   : > { %684 = vrot.lane.b32.xlu1 %v680_v17, %s1775_s13 }
  0x96   : > { %809 = vrot.lane.b32.xlu2 %v805_v20, %s1777_s7  ;;  %v1782_v20 = vmov 0.0  }
  0x97   : > { %932 = vrot.lane.b32.xlu1 %v929_v22, %s1778_s8  ;;  %268 = vst.msk [vmem:[#allocation2 + $0x8] sm:$0xf] %vm267_vm10, %v1782_v20 }
  0x9e   : > { %811 = vrot.lane.b32.xlu2 %v806_v24, %s1777_s7  ;;  %v1400_v24 = vld [vmem:[%s2048_s2] sm:$0xf]  ;;  %s1622_s7 = smul.u32 12, %s242_s6 }
  0x9f   : > { %1059 = vrot.lane.b32.xlu1 %v1055_v25, %s1779_s9 }
  0xa4   : > { %v558_v46 = vpop.permute.xlu0 %557 }
  0xa6   : > { %934 = vrot.lane.b32.xlu2 %v930_v23, %s1778_s8  ;;  %v1412_v23 = vld [vmem:[%s2049_s3] sm:$0xf] }
  0xa7   : > { %1061 = vrot.lane.b32.xlu1 %v1056_v28, %s1779_s9 }
  0xad   : > { %v687_v54 = vpop.permute.xlu0 %686 }
  0xae   : > { %936 = vrot.lane.b32.xlu2 %v931_v27, %s1778_s8  ;;  %v1917_v35 = vpop.trf.xlu2  ;;  %s1624_s8 = smul.u32 12, %s1764_s18 }
  0xaf   : > { %1186 = vrot.lane.b32.xlu1 %v1181_v29, %s1780_s10 }
  0xb0   : > { %s1442_s12 = scalar_lea.hbm %s2050_s4, %s1624_s8 }
  0xb1   : > { %s1446_s14 = sshll.u32 %s1442_s12, 4  ;;  %s1447_s14 = int_to_ptr.hbm [resolvable:$true] %s1446_s14 }
  0xb2   : > { %s1708_s22 = sshra.s32 %s1447_s14, 4  ;;  %s1709_s22 = int_to_ptr.hbm [resolvable:$true] %s1708_s22 }
  0xb3   : > { %s1710_s18 = scalar_lea.hbm %s1709_s22, 12  ;;  %p1715_p1 = scmp.lt.s32.totalorder %s1709_s22, %s2050_s4 }
  0xb4   : > { %p1711_p12 = scmp.ne.s32.totalorder %s1709_s22, %s1710_s18  ;;  %p1716_p2 = scmp.lt.s32.totalorder %s1714_s29, %s1710_s18 }
  0xb6   : > { %1184 = vrot.lane.b32.xlu2 %v1180_v30, %s1780_s10  ;;  %p1712_p13 = pnand %p1711_p12, %p1850_p4  ;;  %p1717_p3 = por %p1716_p2, %p1715_p1 }
  0xb7   : > { %1311 = vrot.lane.b32.xlu1 %v1306_v32, %s1781_s11 }
  0xb8   : > { %p1713_p0 = pneg %p1712_p13 }
  0xb9   : > { %v1919_v36 = vpop.trf.xlu1 }
  0xba   : > { %p1718_p5 = pnand %p1717_p3, %p1713_p0 }
  0xbe   : > { %1182 = vrot.lane.b32.xlu2 %v1179_v31, %s1780_s10 }
  0xbf   : > { %1307 = vrot.lane.b32.xlu1 %v1304_v33, %s1781_s11 }
  0xc6   : > { %1309 = vrot.lane.b32.xlu2 %v1305_v34, %s1781_s11 }
  0xd8   : > { %v437_v37 = vpop.permute.xlu2 %436 }
  0xd9   : > { %1568 = vmatpush.msk.msrb.mxu1 %vm318_vm0, %v437_v37 }
  0xdc   : > { %1693 = vset.pattern.permute.xlu0 %v1783_v21 }
  0xe0   : > { %v683_v38 = vpop.permute.xlu2 %682 }
  0xe1   : > { %v433_v39 = vpop.permute.xlu1 %432 }
  0xe3   : > { %1057 = vrot.lane.b32.xlu0 %v1054_v26, %s1779_s9  ;;  %s244_s9 = scalar_lea.vmem [#allocation3], %s1622_s7 }
  0xe4   : > { %s1444_s13 = sshll.u32 %s244_s9, 4  ;;  %s1445_s13 = int_to_ptr.vmem [resolvable:$true] %s1444_s13 }
  0xe8   : > { %v808_v40 = vpop.permute.xlu2 %807 }
  0xe9   : > { %v435_v41 = vpop.permute.xlu1 %434 }
  0xea   : > { %v439_v43 = vsel %vm438_vm1, %v433_v39, %v435_v41  ;;  %v440_v44 = vsel %vm438_vm1, %v435_v41, %v437_v37 }
  0xeb   : > { %1564 = vmatpush.msk.msra.mxu3 %vm318_vm0, %v439_v43  ;;  %1566 = vmatpush.msk.msrb.mxu0 %vm318_vm0, %v440_v44  ;;  %v272_v44 = vld [vmem:[#allocation2 + $0x8] sm:$0xf] }
  0xec   : > { %1019 = vxpose.xlu2.b32.start.end [1/1] (short) (narrow) %v1598_v42, 8 }
  0xf0   : > { %v810_v45 = vpop.permute.xlu2 %809 }
  0xf1   : > { %v560_v47 = vpop.permute.xlu1 %559  ;;  %v814_v0 = vsel %vm813_vm5, %v808_v40, %v810_v45 }
  0xf2   : > { %v564_v50 = vsel %vm563_vm2, %v558_v46, %v560_v47 }
  0xf3   : > { %1571 = vmatpush.msk.msrb.mxu2 %vm318_vm0, %v564_v50 }
  0xf4   : > { %1144 = vxpose.xlu1.b32.start.end [1/1] (short) (narrow) %v1605_v48, 8  ;;  %1269 = vxpose.xlu2.b32.start.end [1/1] (short) (narrow) %v1612_v49, 8 }
  0xf8   : > { %v812_v51 = vpop.permute.xlu2 %811 }
  0xf9   : > { %v562_v52 = vpop.permute.xlu1 %561  ;;  %v815_v63 = vsel %vm813_vm5, %v810_v45, %v812_v51 }
  0xfa   : > { %v565_v53 = vsel %vm563_vm2, %v560_v47, %v562_v52 }
  0xfb   : > { %1573 = vmatpush.msk.msrb.mxu3 %vm318_vm0, %v565_v53 }
 0x100   : > { %v935_v55 = vpop.permute.xlu2 %934 }
 0x101   : > { %v685_v56 = vpop.permute.xlu1 %684  ;;  %v290_v59 = vpop.trf.xlu0 }
 0x102   : > { %v689_v57 = vsel %vm688_vm3, %v683_v38, %v685_v56  ;;  %v690_v58 = vsel %vm688_vm3, %v685_v56, %v687_v54  ;;  %1560 = vmatmul.msk.f32.vlgmr.msra.gmra.mxu1 %vm314_vm4, %v290_v59  ;;  %1562 = vmatmul.msk.f32.vlgmr.msra.gmra.mxu2 %vm314_vm4, %v290_v59 }
 0x103   : > { %1578 = vmatpush.msk.msra.mxu1 %vm318_vm0, %v689_v57  ;;  %1580 = vmatpush.msk.msra.mxu2 %vm318_vm0, %v690_v58 }
 0x104   : > { %1558 = vmatmul.msk.f32.vlgmr.msra.gmra.mxu0 %vm314_vm4, %v290_v59 }
 0x105   : > { %1575 = vmatpush.msk.msra.mxu0 %vm318_vm0, %v562_v52 }
 0x108   : > { %v937_v60 = vpop.permute.xlu2 %936 }
 0x109   : > { %v933_v61 = vpop.permute.xlu1 %932  ;;  %v410_v62 = vpop.trf.xlu0  ;;  %v940_v4 = vsel %vm938_vm6, %v935_v55, %v937_v60 }
 0x10a   : > { %1565 = vmatmul.msk.f32.vlgmr.msra.gmra.mxu3 %vm314_vm4, %v410_v62  ;;  %1569 = vmatmul.msk.f32.vlgmr.msrb.gmra.mxu1 %vm314_vm4, %v410_v62  ;;  %v939_v3 = vsel %vm938_vm6, %v933_v61, %v935_v55 }
 0x10b   : > { %1572 = vmatmul.msk.f32.vlgmr.msrb.gmra.mxu2 %vm314_vm4, %v1917_v35  ;;  %1582 = vmatpush.msk.msra.mxu3 %vm318_vm0, %v687_v54 }
 0x10c   : > { %1587 = vmatpush.msk.msrb.mxu1 %vm318_vm0, %v815_v63  ;;  %1589 = vmatpush.msk.msrb.mxu2 %vm318_vm0, %v812_v51 }
 0x10d   : > { %1567 = vmatmul.msk.f32.vlgmr.msrb.gmra.mxu0 %vm314_vm4, %v410_v62 }
 0x10e   : > { %1585 = vmatpush.msk.msrb.mxu0 %vm318_vm0, %v814_v0 }
 0x110   : > { %v1185_v1 = vpop.permute.xlu2 %1184 }
 0x111   : > { %v1060_v2 = vpop.permute.xlu1 %1059  ;;  %v785_v5 = vpop.trf.xlu0 }
 0x112   : > { %1574 = vmatmul.msk.f32.vlgmr.msrb.gmra.mxu3 %vm314_vm4, %v1917_v35  ;;  %1579 = vmatmul.msk.f32.vlgmr.msra.gmra.mxu1 %vm314_vm4, %v1919_v36 }
 0x113   : > { %1592 = vmatpush.msk.msrb.mxu3 %vm318_vm0, %v939_v3  ;;  %1596 = vmatpush.msk.msra.mxu1 %vm318_vm0, %v937_v60 }
 0x114   : > { %1581 = vmatmul.msk.f32.vlgmr.msra.gmra.mxu2 %vm314_vm4, %v1919_v36 }
 0x115   : > { %1576 = vmatmul.msk.f32.vlgmr.msra.gmra.mxu0 %vm314_vm4, %v1917_v35 }
 0x116   : > { %1594 = vmatpush.msk.msra.mxu0 %vm318_vm0, %v940_v4 }
 0x118   : > { %v1183_v6 = vpop.permute.xlu2 %1182 }
 0x119   : > { %v1062_v7 = vpop.permute.xlu1 %1061  ;;  %v1189_v9 = vsel %vm1188_vm8, %v1183_v6, %v1185_v1  ;;  %v910_v11 = vpop.trf.xlu0  ;;  %v1784_v6 = vmov 839922192  }
 0x11a   : > { %v1065_v8 = vsel %vm1063_vm7, %v1060_v2, %v1062_v7  ;;  %1583 = vmatmul.msk.f32.vlgmr.msra.gmra.mxu3 %vm314_vm4, %v1919_v36  ;;  %1588 = vmatmul.msk.f32.vlgmr.msrb.gmra.mxu1 %vm314_vm4, %v785_v5 }
 0x11b   : > { %1601 = vmatpush.msk.msra.mxu3 %vm318_vm0, %v1065_v8  ;;  %1606 = vmatpush.msk.msrb.mxu1 %vm318_vm0, %v1189_v9 }
 0x11c   : > { %1590 = vmatmul.msk.f32.vlgmr.msrb.gmra.mxu2 %vm314_vm4, %v785_v5 }
 0x11d   : > { %1586 = vmatmul.msk.f32.vlgmr.msrb.gmra.mxu0 %vm314_vm4, %v785_v5 }
 0x11e   : > { %1603 = vmatpush.msk.msrb.mxu0 %vm318_vm0, %v1062_v7  ;;  %v1406_v7 = vunpack.c.l.s4 %v1784_v6 }
 0x120   : > { %v1310_v12 = vpop.permute.xlu2 %1309 }
 0x121   : > { %v1187_v10 = vpop.permute.xlu1 %1186 }
 0x122   : > { %1593 = vmatmul.msk.f32.vlgmr.msrb.gmra.mxu3 %vm314_vm4, %v910_v11  ;;  %1597 = vmatmul.msk.f32.vlgmr.msra.gmra.mxu1 %vm314_vm4, %v910_v11  ;;  %v1190_v19 = vsel %vm1188_vm8, %v1185_v1, %v1187_v10 }
 0x123   : > { %1610 = vmatpush.msk.msrb.mxu3 %vm318_vm0, %v1187_v10 }
 0x125   : > { %1595 = vmatmul.msk.f32.vlgmr.msra.gmra.mxu0 %vm314_vm4, %v910_v11 }
 0x129   : > { %v1312_v13 = vpop.permute.xlu1 %1311 }
 0x12a   : > { %v1315_v14 = vsel %vm1313_vm9, %v1310_v12, %v1312_v13 }
 0x12b   : > { %1615 = vmatpush.msk.msra.mxu1 %vm318_vm0, %v1315_v14 }
 0x131   : > { %v1308_v15 = vpop.permute.xlu1 %1307 }
 0x132   : > { %v1314_v16 = vsel %vm1313_vm9, %v1308_v15, %v1310_v12 }
 0x133   : > { %1613 = vmatpush.msk.msra.mxu0 %vm318_vm0, %v1314_v16 }
 0x147   : > { %1692 = vset.pattern.permute.xlu1 %v1783_v21 }
 0x14e   : > { %1415 = vperm.xlu1 %1692, %v1412_v23  }
 0x155   : > { %v1058_v17 = vpop.permute.xlu0 %1057 }
 0x156   : > { %v1064_v18 = vsel %vm1063_vm7, %v1058_v17, %v1060_v2  ;;  %1691 = vset.pattern.permute.xlu2 %v1783_v21 }
 0x157   : > { %1599 = vmatpush.msk.msra.mxu2 %vm318_vm0, %v1064_v18 }
 0x159   : > { %1608 = vmatpush.msk.msrb.mxu2 %vm318_vm0, %v1190_v19 }
 0x15d   : > { %1403 = vperm.xlu2 %1691, %v1400_v24  }
 0x17f   : > { %v362_v27 = vpop.f32.mrf.mxu1 }
 0x180   : > { %v387_v37 = vrot.slane %v362_v27, 4 }
 0x181   : > { %v342_v28 = vpop.f32.mrf.mxu0 }
 0x182   : > { %v388_v41 = vsel %vm318_vm0, %v342_v28, %v387_v37 }
 0x185   : > { %v1035_v22 = vpop.trf.xlu2  ;;  %v382_v29 = vpop.f32.mrf.mxu2 }
 0x186   : > { %1600 = vmatmul.msk.f32.vlgmr.msra.gmra.mxu2 %vm314_vm4, %v1035_v22  ;;  %1602 = vmatmul.msk.f32.vlgmr.msra.gmra.mxu3 %vm314_vm4, %v1035_v22  ;;  %v391_v47 = vadd.f32 %v382_v29, %v272_v44 }
 0x187   : > { %1604 = vmatmul.msk.f32.vlgmr.msrb.gmra.mxu0 %vm314_vm4, %v1035_v22  ;;  %1617 = vmatpush.msk.msra.mxu2 %vm318_vm0, %v1312_v13  ;;  %v507_v31 = vpop.f32.mrf.mxu1  ;;  %v1407_v13 = vunpack.c.0.s8 %v1406_v7 }
 0x188   : > { %v516_v54 = vadd.f32 %v507_v31, %v391_v47 }
 0x18a   : > { %v487_v32 = vpop.f32.mrf.mxu0 }
 0x18b   : > { %v512_v42 = vrot.slane %v487_v32, 4 }
 0x18d   : > { %v1285_v25 = vpop.trf.xlu2  ;;  %v467_v30 = vpop.f32.mrf.mxu3 }
 0x18e   : > { %v592_v33 = vpop.f32.mrf.mxu2  ;;  %v513_v45 = vsel %vm318_vm0, %v467_v30, %v512_v42 }
 0x18f   : > { %1614 = vmatmul.msk.f32.vlgmr.msra.gmra.mxu0 %vm314_vm4, %v1285_v25  ;;  %v717_v35 = vpop.f32.mrf.mxu1  ;;  %v515_v48 = vadd.f32 %v513_v45, %v388_v41 }
 0x192   : > { %v632_v36 = vpop.f32.mrf.mxu0 }
 0x193   : > { %v641_v59 = vadd.f32 %v632_v36, %v516_v54 }
 0x195   : > { %v612_v34 = vpop.f32.mrf.mxu3 }
 0x196   : > { %v637_v46 = vrot.slane %v612_v34, 4 }
 0x197   : > { %v737_v38 = vpop.f32.mrf.mxu2  ;;  %v862_v40 = vpop.f32.mrf.mxu1 }
 0x198   : > { %v1160_v26 = vpop.trf.xlu1  ;;  %v638_v51 = vsel %vm318_vm0, %v592_v33, %v637_v46  ;;  %v762_v52 = vrot.slane %v737_v38, 4  ;;  %v887_v58 = vrot.slane %v862_v40, 4 }
 0x199   : > { %1607 = vmatmul.msk.f32.vlgmr.msrb.gmra.mxu1 %vm314_vm4, %v1160_v26  ;;  %1609 = vmatmul.msk.f32.vlgmr.msrb.gmra.mxu2 %vm314_vm4, %v1160_v26  ;;  %v640_v55 = vadd.f32 %v638_v51, %v515_v48 }
 0x19a   : > { %1611 = vmatmul.msk.f32.vlgmr.msrb.gmra.mxu3 %vm314_vm4, %v1160_v26  ;;  %v842_v43 = vpop.f32.mrf.mxu0  ;;  %v763_v57 = vsel %vm318_vm0, %v717_v35, %v762_v52 }
 0x19b   : > { %v765_v60 = vadd.f32 %v763_v57, %v640_v55  ;;  %v888_v63 = vsel %vm318_vm0, %v842_v43, %v887_v58 }
 0x19d   : > { %v757_v39 = vpop.f32.mrf.mxu3  ;;  %v890_v4 = vadd.f32 %v888_v63, %v765_v60 }
 0x19e   : > { %v766_v2 = vadd.f32 %v757_v39, %v641_v59 }
 0x19f   : > { %v882_v49 = vpop.f32.mrf.mxu2  ;;  %v1007_v53 = vpop.f32.mrf.mxu1 }
 0x1a0   : > { %v891_v9 = vadd.f32 %v882_v49, %v766_v2 }
 0x1a1   : > { %1616 = vmatmul.msk.f32.vlgmr.msra.gmra.mxu1 %vm314_vm4, %v1285_v25  ;;  %1618 = vmatmul.msk.f32.vlgmr.msra.gmra.mxu2 %vm314_vm4, %v1285_v25 }
 0x1a2   : > { %v987_v56 = vpop.f32.mrf.mxu0  ;;  %v1016_v18 = vadd.f32 %v1007_v53, %v891_v9 }
 0x1a3   : > { %v1012_v0 = vrot.slane %v987_v56, 4 }
 0x1a5   : > { %v967_v50 = vpop.f32.mrf.mxu3 }
 0x1a6   : > { %v1013_v8 = vsel %vm318_vm0, %v967_v50, %v1012_v0 }
 0x1a7   : > { %v1015_v11 = vadd.f32 %v1013_v8, %v890_v4 }
 0x1b7   : > { %v1404_v15 = vpop.permute.xlu2 %1403 }
 0x1b8   : > { %v1408_v25 = vperm.slane %v1404_v15, %v1407_v13 }
 0x1c0   : > { %v1416_v21 = vpop.permute.xlu1 %1415 }
 0x1c1   : > { %v1420_v29 = vperm.slane %v1416_v21, %v1407_v13 }
 0x204   : > { %v1132_v5 = vpop.f32.mrf.mxu0 }
 0x205   : > { %v1141_v26 = vadd.f32 %v1132_v5, %v1016_v18 }
 0x209   : > { %v1112_v61 = vpop.f32.mrf.mxu3  ;;  %v1092_v62 = vpop.f32.mrf.mxu2 }
 0x20a   : > { %v1137_v3 = vrot.slane %v1112_v61, 4 }
 0x20c   : > { %v1138_v10 = vsel %vm318_vm0, %v1092_v62, %v1137_v3  ;;  %v1342_v24 = vpop.f32.mrf.mxu0 }
 0x20d   : > { %v1140_v16 = vadd.f32 %v1138_v10, %v1015_v11 }
 0x216   : > { %v1217_v1 = vpop.f32.mrf.mxu1 }
 0x21c   : > { %v1237_v12 = vpop.f32.mrf.mxu2 }
 0x21d   : > { %v1262_v14 = vrot.slane %v1237_v12, 4  ;;  %v1257_v23 = vpop.f32.mrf.mxu3 }
 0x21e   : > { %v1362_v17 = vpop.f32.mrf.mxu1  ;;  %v1266_v30 = vadd.f32 %v1257_v23, %v1141_v26 }
 0x21f   : > { %v1263_v19 = vsel %vm318_vm0, %v1217_v1, %v1262_v14  ;;  %v1387_v20 = vrot.slane %v1362_v17, 4 }
 0x220   : > { %v1265_v22 = vadd.f32 %v1263_v19, %v1140_v16 }
 0x221   : > { %v1388_v27 = vsel %vm318_vm0, %v1342_v24, %v1387_v20 }
 0x222   : > { %v1390_v28 = vadd.f32 %v1388_v27, %v1265_v22 }
 0x224   : > { %v1382_v31 = vpop.f32.mrf.mxu2  ;;  %v1410_v32 = vmul.f32 %v1408_v25, %v1390_v28 }
 0x225   : > { %v1391_v33 = vadd.f32 %v1382_v31, %v1266_v30 }
 0x226   : > { %v1422_v34 = vadd.f32 %v1420_v29, %v1410_v32 }
 0x227   : > { %1394 = vst.msk [vmem:[#allocation2 + $0x8] sm:$0xf] %vm267_vm10, %v1391_v33 }
 0x228   : > { %v1424_v35 = vmax.f32 %v1422_v34, 0.0 }
 0x22a   : > { %1426 = vst [vmem:[%s244_s9] sm:$0xff] %v1424_v35 }
 0x22e   : > { %v1399_v36 = vld [vmem:[#allocation2 + $0x8] sm:$0xf] }
 0x22f   : > { %v1411_v37 = vmul.f32 %v1408_v25, %v1399_v36 }
 0x231   : > { %v1423_v38 = vadd.f32 %v1420_v29, %v1411_v37 }
 0x233   : > { %v1425_v39 = vmax.f32 %v1423_v38, 0.0 }
 0x235   : > { %1427 = vst.msk [vmem:[%s244_s9 + $0x8] sm:$0xf] %vm267_vm10, %v1425_v39 }
 0x236   : > { %1721 = shalt.err (!%p1718_p5)
}
 0x237   : > { %1625 = dma.vmem_to_hbm [thread:$0]  (%p1850_p4), %s1445_s13, 192, %s1447_s14, %s1429_s21  }
 0x238 PF: > { %p1631_p6 = scmp.ge.s32.totalorder %s1772_s20, 2  ;;  %s1458_s6 = sand.u32 1, %s1752_s15  }
 0x239   : > { %s1459_s7 = scalar_lea.sflag [#allocation4], %s1458_s6 }
 0x23a   : > { %p1628_p7 = pnand %p1631_p6, %p1857_p8 }
 0x23c   : > { %p1629_p9 = pneg %p1628_p7 }
 0x23e   : > { %1747 = dma.done.wait (%p1629_p9), %s1459_s7, 192  }
 0x23f   : > { %1749 = vsyncadd (%p1629_p9), %s1459_s7, 4294967104  ;;  %s17_s20 = sadd.s32 1, %s1772_s20   ;;  %s2053_s15 = smov %s1756_s16 }
 0x240   : > { %p14_p10 = scmp.ge.s32.totalorder %s17_s20, 4   ;;  %s2054_s16 = smov %s1760_s17 }
 0x241   : > { %s2055_s17 = smov %s1863_s28  ;;  %s2056_s18 = smov %s1768_s19 }
 0x242   : > { %s2057_s19 = smov %s2059_s23  ;;  %16 = sbr.rel (!%p14_p10) target bundleno = 4 (0x4), region = 99 }
 0x247   :  { %1465 = vsyncpa [#allocation4], 1 }
 0x248   :  { %1467 = vsyncpa [#allocation4 + $0x1], 1 }

</bundles_post_ra>
